<compile_context>
chip_gen: v5e
topology: v5e:2x2
jax: 0.10.0
libtpu: 0.0.40
codegen_flags: <defaults>
</compile_context>

<pallas_src>
import jax
import jax.numpy as jnp
from jax.experimental import pallas as pl
from jax.experimental.pallas import tpu as pltpu

LANES = 128
SUBLANES = 8
CHUNK = SUBLANES * LANES                 # 1024 elements = one (8, 128) vreg tile
TARGET_BLOCK_BYTES = 2 * 1024 * 1024     # ~2 MiB per input per grid step
MAX_ROW_TILE = 8192                      # hard cap on rows per block
VMEM_LIMIT_BYTES = 32 * 1024 * 1024      # safe on v5e/v6e/v7x


def _num_core_splits():
    """2-way grid split only on multi-TensorCore chips (v7x); 1 elsewhere."""
    try:
        kind = jax.devices()[0].device_kind.lower()
    except Exception:
        return 1
    return 2 if "v7" in kind else 1


def _make_kernel(row_tile, rows, num_blocks, steps, num_splits):
    """All arguments are Python statics captured in the closure."""
    has_partial = (rows % row_tile) != 0
    has_overhang = (num_splits * steps) != num_blocks
    groups = row_tile // SUBLANES
    last_real = num_blocks - 1
    partial_rows = rows - last_real * row_tile   # valid rows in the last block

    def kernel(p_ref, a_ref, out_ref, acc_ref):
        c = pl.program_id(0)
        i = pl.program_id(1)

        @pl.when(i == 0)
        def _init():
            acc_ref[...] = jnp.zeros_like(acc_ref)

        # Scaling hoisted to the wrapper: (s*p - s*a)^2 == s^2 * (p - a)^2.
        diff = p_ref[...].astype(jnp.float32) - a_ref[...].astype(jnp.float32)
        sq = diff * diff

        def accumulate(vals):
            # Keep the accumulator vreg-shaped: elementwise VPU adds every
            # step; the cross-lane reduction happens once, in the wrapper.
            acc_ref[...] += vals.reshape(groups, SUBLANES, LANES).sum(axis=0)

        if has_partial or has_overhang:
            blk = c * steps + i

            # Hot path: full, in-range blocks -- no iota / compare / select.
            @pl.when(blk < last_real)
            def _full():
                accumulate(sq)

            # The single last real block: only place masking may be needed.
            @pl.when(blk == last_real)
            def _last():
                if has_partial:
                    # Cheap (row_tile, 1) sublane iota; jnp.where broadcasts
                    # it across lanes.  Select (not multiply-by-mask) so any
                    # OOB NaN/Inf garbage cannot leak into the sum.
                    row_iota = jax.lax.broadcasted_iota(
                        jnp.int32, (row_tile, 1), 0)
                    accumulate(jnp.where(row_iota < partial_rows, sq, 0.0))
                else:
                    accumulate(sq)

            # blk > last_real (duplicated clamped block on the odd-split
            # core): contributes nothing -- no accumulate branch at all.
        else:
            # Common case: every block is full and in range -- no masking,
            # no block-index scalar math.
            accumulate(sq)

        @pl.when(i == pl.num_programs(1) - 1)
        def _finalize():
            out_ref[0] = acc_ref[...]

    return kernel


def log_exploration_loss(pred_gain, actual_gain, scaling_factor=100.0):
    assert pred_gain.shape == actual_gain.shape
    n_elems = pred_gain.size

    p_flat = pred_gain.reshape(-1)
    a_flat = actual_gain.reshape(-1)

    aligned = (n_elems // CHUNK) * CHUNK
    tail_sum = jnp.float32(0.0)

    if aligned == 0:
        # Fewer than one (8,128) chunk: pad this tiny input to a single chunk
        # (zeros contribute (0-0)^2 = 0) and run a one-block kernel.
        pad = CHUNK - n_elems
        p_bulk = jnp.pad(p_flat, (0, pad))
        a_bulk = jnp.pad(a_flat, (0, pad))
        aligned = CHUNK
    elif aligned == n_elems:
        p_bulk, a_bulk = p_flat, a_flat
    else:
        # Ragged: stream the aligned bulk through the kernel (no full-array
        # pad); reduce the <1024-element tail with plain XLA and combine.
        p_bulk = p_flat[:aligned]
        a_bulk = a_flat[:aligned]
        pt = p_flat[aligned:].astype(jnp.float32)
        at = a_flat[aligned:].astype(jnp.float32)
        tail_sum = jnp.sum((pt - at) ** 2)

    rows = aligned // LANES                      # multiple of 8

    # Dtype-aware block size: ~2 MiB per input per grid step.
    itemsize = max(jnp.dtype(pred_gain.dtype).itemsize,
                   jnp.dtype(actual_gain.dtype).itemsize)
    row_tile = TARGET_BLOCK_BYTES // (LANES * itemsize)
    row_tile = max(SUBLANES, (row_tile // SUBLANES) * SUBLANES)
    row_tile = min(row_tile, MAX_ROW_TILE, rows)

    num_blocks = pl.cdiv(rows, row_tile)
    num_splits = max(1, min(_num_core_splits(), num_blocks))
    steps = pl.cdiv(num_blocks, num_splits)

    p2d = p_bulk.reshape(rows, LANES)
    a2d = a_bulk.reshape(rows, LANES)

    def in_index_map(c, i):
        # Clamp so the DMA never starts entirely past the array; the kernel
        # skips accumulation for any duplicated (clamped) block.
        return (jnp.minimum(c * steps + i, num_blocks - 1), 0)

    partials = pl.pallas_call(
        _make_kernel(row_tile, rows, num_blocks, steps, num_splits),
        out_shape=jax.ShapeDtypeStruct(
            (num_splits, SUBLANES, LANES), jnp.float32),
        grid_spec=pltpu.PrefetchScalarGridSpec(
            num_scalar_prefetch=0,
            grid=(num_splits, steps),
            in_specs=[
                pl.BlockSpec((row_tile, LANES), in_index_map),
                pl.BlockSpec((row_tile, LANES), in_index_map),
            ],
            out_specs=pl.BlockSpec((1, SUBLANES, LANES), lambda c, i: (c, 0, 0)),
            scratch_shapes=[pltpu.VMEM((SUBLANES, LANES), jnp.float32)],
        ),
        compiler_params=pltpu.CompilerParams(
            dimension_semantics=("parallel", "arbitrary"),
            vmem_limit_bytes=VMEM_LIMIT_BYTES,
        ),
        cost_estimate=pl.CostEstimate(
            flops=3 * aligned,
            transcendentals=0,
            bytes_accessed=2 * aligned * int(itemsize)
            + num_splits * SUBLANES * LANES * 4,
        ),
    )(p2d, a2d)

    total = jnp.sum(partials, dtype=jnp.float32) + tail_sum
    scale_sq = jnp.float32(scaling_factor) * jnp.float32(scaling_factor)
    return total * scale_sq / jnp.float32(n_elems)


def _reference(pred_gain, actual_gain, scaling_factor=100.0):
    p = scaling_factor * pred_gain.astype(jnp.float32)
    a = scaling_factor * actual_gain.astype(jnp.float32)
    return jnp.mean((p - a) ** 2)


if __name__ == "__main__":
    key = jax.random.PRNGKey(0)

    # (2,4,16,16): small per-pixel gain tensor (single tile, exactly aligned).
    # (4,260,130): ragged size -> aligned bulk through kernel + XLA tail.
    # (4,1000,200): large enough to exercise multiple blocks, the masked
    #               partial trailing block, and the ragged tail.
    for shape in [(2, 4, 16, 16), (4, 260, 130), (4, 1000, 200)]:
        k1, k2 = jax.random.split(jax.random.fold_in(key, shape[-1]))
        pred_gain = jax.random.normal(k1, shape, dtype=jnp.float32)
        actual_gain = jax.random.normal(k2, shape, dtype=jnp.float32)

        loss = jax.block_until_ready(log_exploration_loss(pred_gain, actual_gain))
        ref = _reference(pred_gain, actual_gain)
        assert jnp.allclose(loss, ref, rtol=1e-4, atol=1e-5), (shape, loss, ref)

    print("KERNEL_OK")
</pallas_src>

<mosaic_0001>
module attributes {stable_mosaic.version = 11 : i64} {
  func.func @kernel(%arg0: i32, %arg1: i32, %arg2: memref<16x128xf32, #tpu.memory_space<vmem>>, %arg3: memref<16x128xf32, #tpu.memory_space<vmem>>, %arg4: memref<1x8x128xf32, #tpu.memory_space<vmem>>, %arg5: memref<8x128xf32, #tpu.memory_space<vmem>>) attributes {dimension_semantics = [#tpu.dimension_semantics<parallel>, #tpu.dimension_semantics<arbitrary>], iteration_bounds = array<i64: 1, 1>, scalar_prefetch = 0 : i64, scratch_operands = 1 : i64, tpu.core_type = #tpu.core_type<tc>, window_params = [{transform_indices = @transform_0, window_bounds = array<i64: 16, 128>}, {transform_indices = @transform_1, window_bounds = array<i64: 16, 128>}, {transform_indices = @transform_2, window_bounds = array<i64: 1, 8, 128>}]} {
    %c0_i32 = arith.constant 0 : i32
    %0 = arith.cmpi eq, %arg1, %c0_i32 : i32
    %1 = arith.extui %0 : i1 to i32
    %c0_i32_0 = arith.constant 0 : i32
    %2 = arith.cmpi ne, %1, %c0_i32_0 : i32
    scf.if %2 {
      %cst_10 = arith.constant 0.000000e+00 : f32
      %15 = vector.broadcast %cst_10 : f32 to vector<8x128xf32>
      %c0_11 = arith.constant 0 : index
      %c0_12 = arith.constant 0 : index
      %16 = vector.load %arg5[%c0_11, %c0_12] : memref<8x128xf32, #tpu.memory_space<vmem>>, vector<8x128xf32>
      tpu.vector_store %arg5[%c0_11, %c0_12], %15 {strides = array<i32>} : memref<8x128xf32, #tpu.memory_space<vmem>>, vector<8x128xf32>,
    } else {
    }
    %c0 = arith.constant 0 : index
    %c0_1 = arith.constant 0 : index
    %3 = vector.load %arg2[%c0, %c0_1] : memref<16x128xf32, #tpu.memory_space<vmem>>, vector<16x128xf32>
    %c0_2 = arith.constant 0 : index
    %c0_3 = arith.constant 0 : index
    %4 = vector.load %arg3[%c0_2, %c0_3] : memref<16x128xf32, #tpu.memory_space<vmem>>, vector<16x128xf32>
    %5 = arith.subf %3, %4 : vector<16x128xf32>
    %6 = arith.mulf %5, %5 : vector<16x128xf32>
    %c0_4 = arith.constant 0 : index
    %c0_5 = arith.constant 0 : index
    %7 = vector.load %arg5[%c0_4, %c0_5] : memref<8x128xf32, #tpu.memory_space<vmem>>, vector<8x128xf32>
    %8 = vector.shape_cast %6 : vector<16x128xf32> to vector<2x8x128xf32>
    %cst = arith.constant dense<0.000000e+00> : vector<8x128xf32>
    %9 = vector.multi_reduction <add>, %8, %cst [0] : vector<2x8x128xf32> to vector<8x128xf32>
    %10 = arith.addf %7, %9 : vector<8x128xf32>
    %c0_6 = arith.constant 0 : index
    %c0_7 = arith.constant 0 : index
    %11 = vector.load %arg5[%c0_6, %c0_7] : memref<8x128xf32, #tpu.memory_space<vmem>>, vector<8x128xf32>
    tpu.vector_store %arg5[%c0_6, %c0_7], %10 {strides = array<i32>} : memref<8x128xf32, #tpu.memory_space<vmem>>, vector<8x128xf32>,
    %c0_i32_8 = arith.constant 0 : i32
    %12 = arith.cmpi eq, %arg1, %c0_i32_8 : i32
    %13 = arith.extui %12 : i1 to i32
    %c0_i32_9 = arith.constant 0 : i32
    %14 = arith.cmpi ne, %13, %c0_i32_9 : i32
    scf.if %14 {
      %c0_10 = arith.constant 0 : index
      %c0_11 = arith.constant 0 : index
      %15 = vector.load %arg5[%c0_10, %c0_11] : memref<8x128xf32, #tpu.memory_space<vmem>>, vector<8x128xf32>
      %c0_12 = arith.constant 0 : index
      %c0_13 = arith.constant 0 : index
      %c0_14 = arith.constant 0 : index
      %16 = vector.load %arg4[%c0_12, %c0_13, %c0_14] : memref<1x8x128xf32, #tpu.memory_space<vmem>>, vector<1x8x128xf32>
      %17 = vector.shape_cast %16 : vector<1x8x128xf32> to vector<8x128xf32>
      %18 = vector.shape_cast %15 : vector<8x128xf32> to vector<1x8x128xf32>
      tpu.vector_store %arg4[%c0_12, %c0_13, %c0_14], %18 {strides = array<i32>} : memref<1x8x128xf32, #tpu.memory_space<vmem>>, vector<1x8x128xf32>,
    } else {
    }
    return
  }
  func.func @transform_0(%arg0: i32, %arg1: i32) -> (i32, i32) {
    %c1_i32 = arith.constant 1 : i32
    %0 = arith.muli %arg0, %c1_i32 : i32
    %1 = arith.addi %0, %arg1 : i32
    %c0_i32 = arith.constant 0 : i32
    %2 = arith.minsi %1, %c0_i32 : i32
    %c0_i32_0 = arith.constant 0 : i32
    %c0_i32_1 = arith.constant 0 : i32
    return %2, %c0_i32_0 : i32, i32
  }
  func.func @transform_1(%arg0: i32, %arg1: i32) -> (i32, i32) {
    %c1_i32 = arith.constant 1 : i32
    %0 = arith.muli %arg0, %c1_i32 : i32
    %1 = arith.addi %0, %arg1 : i32
    %c0_i32 = arith.constant 0 : i32
    %2 = arith.minsi %1, %c0_i32 : i32
    %c0_i32_0 = arith.constant 0 : i32
    %c0_i32_1 = arith.constant 0 : i32
    return %2, %c0_i32_0 : i32, i32
  }
  func.func @transform_2(%arg0: i32, %arg1: i32) -> (i32, i32, i32) {
    %c0_i32 = arith.constant 0 : i32
    %c0_i32_0 = arith.constant 0 : i32
    %c0_i32_1 = arith.constant 0 : i32
    return %arg0, %c0_i32, %c0_i32_0 : i32, i32, i32
  }
}

</mosaic_0001>

<bundles_post_ra>
// kernel: tpu_custom_call.1
= control target key start
LH: loop header
LB: loop body
LE: loop exit
PB: predicated region body
PF: predicated region fallthrough
CT: control target
= control target key end

     0   :  { %7 = vsyncpa [#allocation4], 0  ;;  %s220_s0 = inlined_call_operand.hbm [shape: f32[16,128], index: 0, kind: input, shape index: {}]   ;;  %s221_s1 = inlined_call_operand.hbm [shape: f32[16,128], index: 1, kind: input, shape index: {}]   ;;  %s222_s2 = inlined_call_operand.hbm [shape: f32[1,8,128], index: 2, kind: output, shape index: {}]  }
   0x1   :  { %8 = vsyncpa [#allocation7], 0 }
   0x2   :  { %9 = vsyncpa [#allocation5], 0  ;;  %s20_s11 = sshll.u32 %s220_s0, 4  ;;  %s191_s12 = smov [#allocation3]   ;;  %s21_s11 = int_to_ptr.hbm [resolvable:$true] %s20_s11 }
   0x3   :  { %s22_s13 = sshll.u32 %s191_s12, 4  ;;  %s39_s16 = sshll.u32 %s221_s1, 4  ;;  %s23_s13 = int_to_ptr.vmem [resolvable:$true] %s22_s13  ;;  %s40_s16 = int_to_ptr.hbm [resolvable:$true] %s39_s16 }
   0x4   :  { %s192_s17 = smov 128   ;;  %s193_s18 = smov 8  }
   0x5   :  { %28 = dma.hbm_to_vmem [thread:$0]  %s21_s11, 256, %s23_s13, [#allocation4], %s192_s17, %s192_s17, %s193_s18  }
   0x6   :  { %s194_s19 = smov [#allocation6]  }
   0x7   :  { %s41_s20 = sshll.u32 %s194_s19, 4  ;;  %s42_s20 = int_to_ptr.vmem [resolvable:$true] %s41_s20 }
   0x8   :  { %47 = dma.hbm_to_vmem [thread:$0]  %s40_s16, 256, %s42_s20, [#allocation7], %s192_s17, %s192_s17, %s193_s18  }
   0x9   :  { %185 = dma.done.wait [#allocation4], 256  }
   0xa   :  { %186 = vsyncadd [#allocation4], 4294967040 }
   0xb   :  { %187 = dma.done.wait [#allocation7], 256  }
   0xc   :  { %188 = vsyncadd [#allocation7], 4294967040  ;;  %v69_v0 = vld [vmem:[#allocation3] sm:$0xff]  ;;  %v70_v1 = vld [vmem:[#allocation3 + $0x8] sm:$0xff]  ;;  %s195_s0 = smov [#allocation8]   ;;  %s93_s23 = sshll.u32 %s222_s2, 4  ;;  %s94_s23 = int_to_ptr.hbm [resolvable:$true] %s93_s23 }
   0xd   :  { %v71_v2 = vld [vmem:[#allocation6] sm:$0xff]  ;;  %v72_v3 = vld [vmem:[#allocation6 + $0x8] sm:$0xff]  ;;  %s91_s1 = sshll.u32 %s195_s0, 4  ;;  %s92_s1 = int_to_ptr.vmem [resolvable:$true] %s91_s1 }
   0xe   :  { %v73_v4 = vsub.f32 %v69_v0, %v71_v2  ;;  %v74_v5 = vsub.f32 %v70_v1, %v72_v3 }
  0x10   :  { %v75_v6 = vmul.f32 %v73_v4, %v73_v4  ;;  %v76_v7 = vmul.f32 %v74_v5, %v74_v5 }
  0x12   :  { %v78_v8 = vadd.f32 %v76_v7, %v75_v6 }
  0x14   :  { %85 = vst [vmem:[#allocation8] sm:$0xff] %v78_v8 }
  0x15   :  { %96 = dma.vmem_to_hbm [thread:$0]  %s92_s1, 128, %s94_s23, [#allocation5]  }
  0x16   :  { %189 = dma.done.wait [#allocation5], 128  }
  0x17   :  { %190 = vsyncadd [#allocation5], 4294967168 }
  0x18   :  { %101 = vsyncpa [#allocation4], 1 }
  0x19   :  { %102 = vsyncpa [#allocation7], 1 }
  0x1a   :  { %103 = vsyncpa [#allocation5], 1 }

</bundles_post_ra>
